<compile_context>
chip_gen: v5e
topology: v5e:2x2
jax: 0.10.0
libtpu: 0.0.40
codegen_flags: <defaults>
</compile_context>

<pallas_src>
import math

import jax
import jax.numpy as jnp
from jax import lax
from jax.experimental import pallas as pl
from jax.experimental.pallas import tpu as pltpu


def _round_up(n, m):
    return ((n + m - 1) // m) * m


def _pick_row_tile(T, target=1024):
    """Row tile along T.

    Big tiles amortize per-step pipeline overhead (~0.35 us/step); keep >= 2
    row tiles whenever T allows so the leading "parallel" grid axis can shard
    across v7x's two TensorCores.  The tile must be a multiple of 8 (f32
    sublane pack) unless it equals T exactly.
    """
    if T >= 16:
        target = min(target, _round_up(-(-T // 2), 8))
    if T <= target:
        return T
    return max(8, (target // 8) * 8)


def _positional_encoding(T, H):
    """Exact semantics of MapNet.positional_encoding, computed once host-side.

    pe[t, 2i]   = sin(t * exp(2i * -ln(10000)/H))
    pe[t, 2i+1] = cos(t * exp(2i * -ln(10000)/H))
    """
    pos = jnp.arange(T, dtype=jnp.float32)[:, None]                     # (T, 1)
    div_term = jnp.exp(
        jnp.arange(0, H, 2, dtype=jnp.float32) * (-(math.log(10000.0) / H)))
    ang = pos * div_term                                                # (T, H//2)
    return jnp.stack([jnp.sin(ang), jnp.cos(ang)], axis=-1).reshape(T, H)


def prepare_params(raw):
    """One-time parameter prep (cast / arrange) done at init, not per forward."""
    return {
        "w_enc": jnp.asarray(raw["w_enc"], jnp.float32),               # (C, H)
        "b_enc": jnp.asarray(raw["b_enc"], jnp.float32).reshape(1, -1),  # (1, H)
        "w_dec": jnp.asarray(raw["w_dec"], jnp.float32),               # (H, O)
        "b_dec": jnp.asarray(raw["b_dec"], jnp.float32).reshape(1, -1),  # (1, O)
    }


def mapnet_kernel(end_ref,    # SMEM (B,) i32     (scalar prefetch)
                  x_ref,      # VMEM (R, C) f32   (this batch's row tile)
                  lc_ref,     # VMEM (1, H) f32   (language_condition + b_enc)
                  pe_ref,     # VMEM (R, H) f32   (precomputed positional enc.)
                  w_enc_ref,  # VMEM (C, H) f32
                  w_dec_ref,  # VMEM (H, O) f32
                  b_dec_ref,  # VMEM (1, O) f32
                  out_ref):   # VMEM (R, O) f32
    r = pl.program_id(0)
    b = pl.program_id(1)
    R = out_ref.shape[0]

    # ---- vqvae stand-in: linear encode over this tile's rows ----------------
    z = jnp.dot(x_ref[...], w_enc_ref[...], preferred_element_type=jnp.float32)
    z = z + lc_ref[...] + pe_ref[...]                    # (R, H)

    # ---- decoder stand-in: ReLU + linear ------------------------------------
    h = jnp.maximum(z, 0.0)
    out = jnp.dot(h, w_dec_ref[...], preferred_element_type=jnp.float32)
    out = out + b_dec_ref[...]                           # (R, O)

    # mask timesteps past end_inds[b] (inclusive)
    t_idx = r * R + lax.broadcasted_iota(jnp.int32, (R, 1), 0)
    valid = t_idx <= end_ref[b]
    out_ref[...] = jnp.where(valid, out, 0.0).astype(out_ref.dtype)


def mapnet_forward(x, end_inds, language_condition, params):
    """x: (B, T, C) f32, end_inds: (B,) int, language_condition: (B, H) f32."""
    B, T, C = x.shape
    H = params["w_enc"].shape[1]
    O = params["w_dec"].shape[1]

    if x.dtype != jnp.float32:
        x = x.astype(jnp.float32)

    R = _pick_row_tile(T)
    nrt = pl.cdiv(T, R)

    # One tiny op per call; constant-folds under jit.  Encoder bias folded in.
    pe = _positional_encoding(T, H)                                    # (T, H)
    lc = (language_condition.astype(jnp.float32) + params["b_enc"])    # (B, H)
    lc = lc.reshape(B, 1, H)
    end_i = end_inds.astype(jnp.int32)                                 # (B,)

    grid_spec = pltpu.PrefetchScalarGridSpec(
        num_scalar_prefetch=1,
        grid=(nrt, B),
        in_specs=[
            # x: one batch's row tile, batch dim squeezed -> kernel sees (R, C)
            pl.BlockSpec((pl.Squeezed(), R, C), lambda r, b, end: (b, r, 0)),
            # lc (+ b_enc): per-batch row, kernel sees (1, H)
            pl.BlockSpec((pl.Squeezed(), 1, H), lambda r, b, end: (b, 0, 0)),
            # pe: row tile along T (constant across the inner b loop)
            pl.BlockSpec((R, H),                lambda r, b, end: (r, 0)),
            # weights / bias: constant-index slabs, DMA'd once
            pl.BlockSpec((C, H),                lambda r, b, end: (0, 0)),
            pl.BlockSpec((H, O),                lambda r, b, end: (0, 0)),
            pl.BlockSpec((1, O),                lambda r, b, end: (0, 0)),
        ],
        out_specs=pl.BlockSpec((pl.Squeezed(), R, O), lambda r, b, end: (b, r, 0)),
    )

    out = pl.pallas_call(
        mapnet_kernel,
        out_shape=jax.ShapeDtypeStruct((B, T, O), jnp.float32),
        grid_spec=grid_spec,
        compiler_params=pltpu.CompilerParams(
            dimension_semantics=("parallel", "parallel"),
            vmem_limit_bytes=32 * 1024 * 1024,
        ),
    )(end_i, x, lc, pe, params["w_enc"], params["w_dec"], params["b_dec"])

    return out


if __name__ == "__main__":
    B, T, C, H, O = 2, 8, 4, 32, 16

    key = jax.random.PRNGKey(0)
    k_x, k_lc, k_we, k_be, k_wd, k_bd = jax.random.split(key, 6)

    x = jax.random.normal(k_x, (B, T, C), dtype=jnp.float32)
    language_condition = jax.random.normal(k_lc, (B, H), dtype=jnp.float32)
    end_inds = jnp.array([7, 5], dtype=jnp.int32)

    raw_params = {
        "w_enc": jax.random.normal(k_we, (C, H), dtype=jnp.float32) * 0.1,
        "b_enc": jax.random.normal(k_be, (1, H), dtype=jnp.float32) * 0.1,
        "w_dec": jax.random.normal(k_wd, (H, O), dtype=jnp.float32) * 0.1,
        "b_dec": jax.random.normal(k_bd, (1, O), dtype=jnp.float32) * 0.1,
    }
    params = prepare_params(raw_params)   # one-time prep (cast/arrange)

    out = mapnet_forward(x, end_inds, language_condition, params)
    jax.block_until_ready(out)
    assert out.shape == (B, T, O)

    # Pure-JAX reference of the same stand-in forward (f32 end to end).
    def ref_forward(x, end_inds, lc, p):
        z = (x @ p["w_enc"] + p["b_enc"][None]
             + lc[:, None, :] + _positional_encoding(T, H)[None])
        o = jnp.maximum(z, 0.0) @ p["w_dec"] + p["b_dec"][None]
        t = jnp.arange(T)[None, :, None]
        return jnp.where(t <= end_inds[:, None, None], o, 0.0)

    ref = ref_forward(x, end_inds, language_condition, params)
    assert jnp.allclose(out, ref, atol=1e-3, rtol=1e-3)

    print("KERNEL_OK")
</pallas_src>

<mosaic_0001>
module attributes {stable_mosaic.version = 11 : i64} {
  func.func @mapnet_kernel(%arg0: i32, %arg1: i32, %arg2: memref<2xi32, #tpu.memory_space<smem>>, %arg3: memref<1x8x4xf32, #tpu.memory_space<vmem>>, %arg4: memref<1x1x32xf32, #tpu.memory_space<vmem>>, %arg5: memref<8x32xf32, #tpu.memory_space<vmem>>, %arg6: memref<4x32xf32, #tpu.memory_space<vmem>>, %arg7: memref<32x16xf32, #tpu.memory_space<vmem>>, %arg8: memref<1x16xf32, #tpu.memory_space<vmem>>, %arg9: memref<1x8x16xf32, #tpu.memory_space<vmem>>) attributes {dimension_semantics = [#tpu.dimension_semantics<parallel>, #tpu.dimension_semantics<parallel>], iteration_bounds = array<i64: 1, 2>, scalar_prefetch = 1 : i64, scratch_operands = 0 : i64, tpu.core_type = #tpu.core_type<tc>, window_params = [{transform_indices = @transform_0, window_bounds = array<i64: 1, 8, 4>}, {transform_indices = @transform_1, window_bounds = array<i64: 1, 1, 32>}, {transform_indices = @transform_2, window_bounds = array<i64: 8, 32>}, {pipeline_mode = #tpu.pipeline_mode<synchronous>, transform_indices = @transform_3, window_bounds = array<i64: 4, 32>}, {pipeline_mode = #tpu.pipeline_mode<synchronous>, transform_indices = @transform_4, window_bounds = array<i64: 32, 16>}, {pipeline_mode = #tpu.pipeline_mode<synchronous>, transform_indices = @transform_5, window_bounds = array<i64: 1, 16>}, {transform_indices = @transform_6, window_bounds = array<i64: 1, 8, 16>}]} {
    %c0 = arith.constant 0 : index
    %c0_0 = arith.constant 0 : index
    %c0_1 = arith.constant 0 : index
    %0 = vector.load %arg3[%c0, %c0_0, %c0_1] : memref<1x8x4xf32, #tpu.memory_space<vmem>>, vector<1x8x4xf32>
    %1 = vector.shape_cast %0 : vector<1x8x4xf32> to vector<8x4xf32>
    %c0_2 = arith.constant 0 : index
    %c0_3 = arith.constant 0 : index
    %2 = vector.load %arg6[%c0_2, %c0_3] : memref<4x32xf32, #tpu.memory_space<vmem>>, vector<4x32xf32>
    %cst = arith.constant dense<0.000000e+00> : vector<8x32xf32>
    %3 = tpu.matmul %1, %2, %cst {dimension_numbers = #tpu.dot_dimension_numbers<[1], [0], [0], [1], [0, 0, 1, 1], [], []>} : vector<8x4xf32>, vector<4x32xf32>, vector<8x32xf32> -> vector<8x32xf32>
    %c0_4 = arith.constant 0 : index
    %c0_5 = arith.constant 0 : index
    %c0_6 = arith.constant 0 : index
    %4 = vector.load %arg4[%c0_4, %c0_5, %c0_6] : memref<1x1x32xf32, #tpu.memory_space<vmem>>, vector<1x1x32xf32>
    %5 = vector.shape_cast %4 : vector<1x1x32xf32> to vector<1x32xf32>
    %6 = vector.broadcast %5 : vector<1x32xf32> to vector<8x32xf32>
    %7 = arith.addf %3, %6 : vector<8x32xf32>
    %c0_7 = arith.constant 0 : index
    %c0_8 = arith.constant 0 : index
    %8 = vector.load %arg5[%c0_7, %c0_8] : memref<8x32xf32, #tpu.memory_space<vmem>>, vector<8x32xf32>
    %9 = arith.addf %7, %8 : vector<8x32xf32>
    %cst_9 = arith.constant 0.000000e+00 : f32
    %10 = vector.broadcast %cst_9 : f32 to vector<8x32xf32>
    %11 = arith.maximumf %9, %10 : vector<8x32xf32>
    %c0_10 = arith.constant 0 : index
    %c0_11 = arith.constant 0 : index
    %12 = vector.load %arg7[%c0_10, %c0_11] : memref<32x16xf32, #tpu.memory_space<vmem>>, vector<32x16xf32>
    %cst_12 = arith.constant dense<0.000000e+00> : vector<8x16xf32>
    %13 = tpu.matmul %11, %12, %cst_12 {dimension_numbers = #tpu.dot_dimension_numbers<[1], [0], [0], [1], [0, 0, 1, 1], [], []>} : vector<8x32xf32>, vector<32x16xf32>, vector<8x16xf32> -> vector<8x16xf32>
    %c0_13 = arith.constant 0 : index
    %c0_14 = arith.constant 0 : index
    %14 = vector.load %arg8[%c0_13, %c0_14] : memref<1x16xf32, #tpu.memory_space<vmem>>, vector<1x16xf32>
    %15 = vector.broadcast %14 : vector<1x16xf32> to vector<8x16xf32>
    %16 = arith.addf %13, %15 : vector<8x16xf32>
    %c8_i32 = arith.constant 8 : i32
    %17 = arith.muli %arg0, %c8_i32 : i32
    %18 = tpu.iota {dimensions = array<i32: 0>} : vector<8x1xi32>
    %19 = vector.broadcast %17 : i32 to vector<8x1xi32>
    %20 = arith.addi %19, %18 : vector<8x1xi32>
    %21 = arith.index_cast %arg1 : i32 to index
    %22 = memref.load %arg2[%21] : memref<2xi32, #tpu.memory_space<smem>>
    %23 = vector.broadcast %22 : i32 to vector<8x1xi32>
    %24 = arith.cmpi sle, %20, %23 : vector<8x1xi32>
    %cst_15 = arith.constant 0.000000e+00 : f32
    %25 = vector.shape_cast %24 : vector<8x1xi1> to vector<8x1xi1>
    %26 = vector.broadcast %25 : vector<8x1xi1> to vector<8x16xi1>
    %27 = vector.broadcast %cst_15 : f32 to vector<8x16xf32>
    %28 = arith.select %26, %16, %27 : vector<8x16xi1>, vector<8x16xf32>
    %c0_16 = arith.constant 0 : index
    %c0_17 = arith.constant 0 : index
    %c0_18 = arith.constant 0 : index
    %29 = vector.load %arg9[%c0_16, %c0_17, %c0_18] : memref<1x8x16xf32, #tpu.memory_space<vmem>>, vector<1x8x16xf32>
    %30 = vector.shape_cast %29 : vector<1x8x16xf32> to vector<8x16xf32>
    %31 = vector.shape_cast %28 : vector<8x16xf32> to vector<1x8x16xf32>
    tpu.vector_store %arg9[%c0_16, %c0_17, %c0_18], %31 {strides = array<i32>} : memref<1x8x16xf32, #tpu.memory_space<vmem>>, vector<1x8x16xf32>,
    return
  }
  func.func @transform_0(%arg0: i32, %arg1: i32, %arg2: memref<2xi32, #tpu.memory_space<smem>>) -> (i32, i32, i32) {
    %c0_i32 = arith.constant 0 : i32
    %c0_i32_0 = arith.constant 0 : i32
    return %arg1, %arg0, %c0_i32 : i32, i32, i32
  }
  func.func @transform_1(%arg0: i32, %arg1: i32, %arg2: memref<2xi32, #tpu.memory_space<smem>>) -> (i32, i32, i32) {
    %c0_i32 = arith.constant 0 : i32
    %c0_i32_0 = arith.constant 0 : i32
    %c0_i32_1 = arith.constant 0 : i32
    return %arg1, %c0_i32, %c0_i32_0 : i32, i32, i32
  }
  func.func @transform_2(%arg0: i32, %arg1: i32, %arg2: memref<2xi32, #tpu.memory_space<smem>>) -> (i32, i32) {
    %c0_i32 = arith.constant 0 : i32
    %c0_i32_0 = arith.constant 0 : i32
    return %arg0, %c0_i32 : i32, i32
  }
  func.func @transform_3(%arg0: i32, %arg1: i32, %arg2: memref<2xi32, #tpu.memory_space<smem>>) -> (i32, i32) {
    %c0_i32 = arith.constant 0 : i32
    %c0_i32_0 = arith.constant 0 : i32
    %c0_i32_1 = arith.constant 0 : i32
    return %c0_i32, %c0_i32_0 : i32, i32
  }
  func.func @transform_4(%arg0: i32, %arg1: i32, %arg2: memref<2xi32, #tpu.memory_space<smem>>) -> (i32, i32) {
    %c0_i32 = arith.constant 0 : i32
    %c0_i32_0 = arith.constant 0 : i32
    %c0_i32_1 = arith.constant 0 : i32
    return %c0_i32, %c0_i32_0 : i32, i32
  }
  func.func @transform_5(%arg0: i32, %arg1: i32, %arg2: memref<2xi32, #tpu.memory_space<smem>>) -> (i32, i32) {
    %c0_i32 = arith.constant 0 : i32
    %c0_i32_0 = arith.constant 0 : i32
    %c0_i32_1 = arith.constant 0 : i32
    return %c0_i32, %c0_i32_0 : i32, i32
  }
  func.func @transform_6(%arg0: i32, %arg1: i32, %arg2: memref<2xi32, #tpu.memory_space<smem>>) -> (i32, i32, i32) {
    %c0_i32 = arith.constant 0 : i32
    %c0_i32_0 = arith.constant 0 : i32
    return %arg1, %arg0, %c0_i32 : i32, i32, i32
  }
}

</mosaic_0001>

<bundles_post_ra>
// kernel: tpu_custom_call.1
= control target key start
LH: loop header
LB: loop body
LE: loop exit
PB: predicated region body
PF: predicated region fallthrough
CT: control target
= control target key end

     0   :  { %s673_s27 = smov [#allocation3]   ;;  %s839_s0 = inlined_call_operand.vmem [shape: s32[2], index: 0, kind: input, shape index: {}]   ;;  %s840_s1 = inlined_call_operand.vmem [shape: f32[2,8,4], index: 1, kind: input, shape index: {}]   ;;  %s841_s2 = inlined_call_operand.vmem [shape: f32[2,1,32], index: 2, kind: input, shape index: {}]   ;;  %s842_s3 = inlined_call_operand.vmem [shape: f32[8,32], index: 3, kind: input, shape index: {}]   ;;  %s843_s4 = inlined_call_operand.vmem [shape: f32[4,32], index: 4, kind: input, shape index: {}]   ;;  %s844_s5 = inlined_call_operand.vmem [shape: f32[32,16], index: 5, kind: input, shape index: {}]   ;;  %s845_s6 = inlined_call_operand.vmem [shape: f32[1,16], index: 6, kind: input, shape index: {}]   ;;  %s846_s7 = inlined_call_operand.hbm [shape: f32[2,8,16], index: 7, kind: output, shape index: {}]  }
   0x1   :  { %s13_s26 = sshll.u32 %s839_s0, 4  ;;  %s14_s26 = int_to_ptr.vmem [resolvable:$true] %s13_s26 }
   0x2   :  { %16 = dma.vmem_to_smem %s14_s26, 16, %s673_s27, [#allocation2] }
   0x3   :  { %643 = dma.done.wait [#allocation2], 16 }
   0x4   :  { %644 = vsyncadd [#allocation2], 4294967280 }
   0x5   :  { %19 = sfence }
   0x6   :  { %20 = vsyncpa [#allocation5], 0 }
   0x7   :  { %22 = vsyncpa [#allocation5 + $0x1], 0  ;;  %s717_s28 = smov 0   ;;  %s719_s29 = smov 0  }
   0x8   :  { %s721_s30 = smov 0   ;;  %s723_s8 = smov 0  }
   0x9   :  { %s725_s9 = smov 0   ;;  %s727_s10 = smov 0  }
   0xa LB: > { %s506_s0 = sadd.s32 4294967295, %s671_s10   ;;  %s507_s11 = sadd.s32 4294967294, %s671_s10   ;;  %s671_s10 = sphi %s727_s10, %s28_s10   ;;  %s667_s9 = sphi %s725_s9, %s853_s9   ;;  %s663_s8 = sphi %s723_s8, %s852_s8   ;;  %s659_s30 = sphi %s721_s30, %s851_s30   ;;  %s655_s29 = sphi %s719_s29, %s850_s29   ;;  %s651_s28 = sphi %s717_s28, %s849_s28  }
   0xb   : > { %s37_s12 = sadd.s32 1, %s667_s9  ;;  %s192_s13 = sadd.s32 1, %s659_s30 }
   0xc   : > { %p38_p0 = scmp.ge.s32.totalorder %s37_s12, 2  ;;  %p202_p1 = scmp.ne.s32.totalorder %s659_s30, %s655_s29 }
   0xd   : > { %p203_p2 = scmp.eq.s32.totalorder %s506_s0, 1  ;;  %p208_p3 = scmp.ne.s32.totalorder %s655_s29, %s651_s28 }
   0xe   : > { %s855_s12 = smov (%p38_p0, %s37_s12), 0  ;;  %p209_p5 = scmp.eq.s32.totalorder %s507_s11, 1 }
   0xf   : > { %p757_p4 = por %p203_p2, %p202_p1  ;;  %s187_s15 = ssub.s32 %s667_s9, %s855_s12 }
  0x10   : > { %p511_p6 = scmp.ge.s32.totalorder %s671_s10, 1  ;;  %p190_p7 = scmp.eq.s32.totalorder %s187_s15, 0 }
  0x11   : > { %p764_p8 = por %p209_p5, %p208_p3  ;;  %p259_p9 = scmp.lt.s32.totalorder %s671_s10, 3 }
  0x12   : > { %s770_s17 = scalar_select %p190_p7, %s659_s30, %s192_s13  }
  0x13   : > { %p260_p10 = pnand %p511_p6, %p259_p9 }
  0x14   : > { %p298_p11 = scmp.lt.s32.totalorder (!%p260_p10), %s663_s8, 1  ;;  %s386_s25 = sld [smem:[#allocation3 + %s663_s8]] (!%p260_p10) }
  0x15   : > { %263 = sbr.rel (%p260_p10) target bundleno = 295 (0x127), region = 44  ;;  %s295_s26 = sand.u32 (!%p260_p10), 1, %s655_s29  }
  0x16   : > { %s518_s0 = sshll.u32 (!%p260_p10), %s663_s8, 3 }
  0x1a   : > { %v313_v0 = vld [vmem:[%s843_s4] sm:$0xf]  ;;  %vm322_vm0 = vcmask 1043456   ;;  %s299_s20 = scalar_select %p298_p11, %s663_s8, 1  ;;  %vm318_vm1 = vcmask 31744   ;;  %v352_v2 = vld [vmem:[%s844_s5 + $0x18] sm:$0xff]  ;;  %v382_v12 = vlaneseq  ;;  %v387_v15 = vstv %s386_s25 }
  0x1b   : > { %514 = vmatpush.msk.msra.mxu0 %vm322_vm0, %v313_v0  ;;  %373 = vmatpush.msra.mxu1 %v352_v2  ;;  %v351_v3 = vld [vmem:[%s844_s5 + $0x10] sm:$0xff]  ;;  %v350_v4 = vld [vmem:[%s844_s5 + $0x8] sm:$0xff]  ;;  %v349_v5 = vld [vmem:[%s844_s5] sm:$0xff]  ;;  %vm357_vm2 = vcmask 261120   ;;  %vm392_vm4 = vcmask 130048   ;;  %s395_s8 = scalar_lea.sflag [#allocation5], %s295_s26 }
  0x1c   : > { %s513_s21 = sshll.u32 %s299_s20, 3  ;;  %s307_s24 = scalar_lea.vmem %s841_s2, %s299_s20  ;;  %v346_v8 = vld [vmem:[%s842_s3] sm:$0xff]  ;;  %v383_v13 = vshrl.u32 %v382_v12, 7 }
  0x1d   : > { %s304_s27 = scalar_lea.vmem %s840_s1, %s513_s21  ;;  %374 = vmatpush.msra.mxu1 %v351_v3  ;;  %v577_v6 = vld [vmem:[%s307_s24] ss:$0 sm:$0xff]  ;;  %s406_s24 = scalar_lea.hbm %s846_s7, %s518_s0 }
  0x1e   : > { %v312_v1 = vld [vmem:[%s304_s27] sm:$0xff]  ;;  %s512_s27 = sshll.u32 %s295_s26, 3  ;;  %s410_s21 = sshll.u32 %s406_s24, 4  ;;  %vm388_vm3 = vcmp.le.s32.totalorder %v383_v13, %v387_v15  ;;  %s411_s21 = int_to_ptr.hbm [resolvable:$true] %s410_s21 }
  0x1f   : > { %515 = vmatmul.msk.f32.vlgmr.msra.gmra.mxu0 %vm318_vm1, %v312_v1  ;;  %375 = vmatpush.msra.mxu1 %v350_v4  ;;  %v578_v14 = vld [vmem:[%s845_s6] ss:$0 sm:$0xff]  ;;  %s297_s19 = scalar_lea.vmem [#allocation4], %s512_s27  ;;  %s605_s22 = sshra.s32 %s411_s21, 4  ;;  %s606_s22 = int_to_ptr.hbm [resolvable:$true] %s605_s22 }
  0x20   : > { %s408_s20 = sshll.u32 %s297_s19, 4  ;;  %s607_s23 = scalar_lea.hbm %s606_s22, 8  ;;  %s409_s20 = int_to_ptr.vmem [resolvable:$true] %s408_s20 }
  0x21   : > { %376 = vmatpush.msra.mxu1 %v349_v5  ;;  %p608_p12 = scmp.ne.s32.totalorder %s606_s22, %s607_s23  ;;  %s611_s0 = scalar_lea.hbm %s846_s7, 16 }
  0x22   : > { %p612_p1 = scmp.lt.s32.totalorder %s606_s22, %s846_s7  ;;  %p613_p2 = scmp.lt.s32.totalorder %s611_s0, %s607_s23 }
  0x23   : > { %p609_p13 = pnand %p608_p12, %p757_p4 }
  0x24   : > { %p614_p3 = por %p613_p2, %p612_p1 }
  0x25   : > { %p610_p0 = pneg %p609_p13 }
  0x27   : > { %p615_p5 = pnand %p614_p3, %p610_p0 }
  0x9c   : > { %v343_v7 = vpop.f32.mrf.mxu0 }
  0x9d   : > { %v344_v9 = vadd.f32 %v577_v6, %v343_v7 }
  0x9f   : > { %v347_v10 = vadd.f32 %v346_v8, %v344_v9 }
  0xa1   : > { %v348_v11 = vmax.f32 %v347_v10, 0.0 }
  0xa3   : > { %516 = vmatmul.msk.f32.vlgmr.msra.gmra.mxu1 %vm357_vm2, %v348_v11 }
 0x120   : > { %v378_v16 = vpop.f32.mrf.mxu1 }
 0x121   : > { %v379_v17 = vadd.f32 %v578_v14, %v378_v16 }
 0x123   : > { %v391_v18 = vsel %vm388_vm3, %v379_v17, 0.0 }
 0x124   : > { %393 = vst.msk [vmem:[%s297_s19] sm:$0xff] %vm392_vm4, %v391_v18 }
 0x125   : > { %618 = shalt.err (!%p615_p5)
}
 0x126   : > { %521 = dma.vmem_to_hbm [thread:$0]  (%p757_p4), %s409_s20, 128, %s411_s21, %s395_s8  }
 0x127 PF: > { %p527_p6 = scmp.ge.s32.totalorder %s671_s10, 2  ;;  %s422_s26 = sand.u32 1, %s651_s28  }
 0x128   : > { %s423_s24 = scalar_lea.sflag [#allocation5], %s422_s26 }
 0x129   : > { %p524_p7 = pnand %p527_p6, %p764_p8 }
 0x12b   : > { %p525_p9 = pneg %p524_p7 }
 0x12d   : > { %646 = dma.done.wait (%p525_p9), %s423_s24, 128  }
 0x12e   : > { %648 = vsyncadd (%p525_p9), %s423_s24, 4294967168  ;;  %s28_s10 = sadd.s32 1, %s671_s10   ;;  %s849_s28 = smov %s655_s29 }
 0x12f   : > { %p25_p10 = scmp.ge.s32.totalorder %s28_s10, 4   ;;  %s850_s29 = smov %s659_s30 }
 0x130   : > { %s851_s30 = smov %s770_s17  ;;  %s852_s8 = smov %s667_s9 }
 0x131   : > { %s853_s9 = smov %s855_s12  ;;  %27 = sbr.rel (!%p25_p10) target bundleno = 10 (0xa), region = 85 }
 0x136   :  { %429 = vsyncpa [#allocation5], 1 }
 0x137   :  { %431 = vsyncpa [#allocation5 + $0x1], 1 }

</bundles_post_ra>
